<compile_context>
chip_gen: v5e
topology: v5e:2x2
jax: 0.10.0
libtpu: 0.0.40
codegen_flags: <defaults>
</compile_context>

<pallas_src>
import jax
import jax.numpy as jnp
from jax.experimental import pallas as pl
from jax.experimental.pallas import tpu as pltpu

IN_FEATURES = 3 * 32 * 32   # 3072
HIDDEN = 20
LANE = 128                  # TPU lane width
NEG_LARGE = -1e30           # masks padded output lanes through softmax


def _round_up(n, m):
    return ((n + m - 1) // m) * m


def _gatenet_softmax_kernel(x_ref, w_ref, b_ref, o_ref):
    # Single fused matmul on the MXU: bf16 operands, f32 accumulation.
    logits = jnp.dot(x_ref[...], w_ref[...], preferred_element_type=jnp.float32)
    logits = logits + b_ref[...]          # padded lanes get NEG_LARGE -> exp == 0
    m = jnp.max(logits, axis=1, keepdims=True)
    e = jnp.exp(logits - m)
    denom = jnp.sum(e, axis=1, keepdims=True)
    o_ref[...] = (e * pl.reciprocal(denom, approx=True)).astype(o_ref.dtype)


def _gatenet_logits_kernel(x_ref, w_ref, b_ref, o_ref):
    logits = jnp.dot(x_ref[...], w_ref[...], preferred_element_type=jnp.float32)
    o_ref[...] = (logits + b_ref[...]).astype(o_ref.dtype)


def gatenet_forward(x_nchw, w1, b1, w2, b2, sm=1):
    """x_nchw: (B, 3, 32, 32) float32.  Returns (B, model_nums) float32."""
    B = x_nchw.shape[0]
    M = w2.shape[1]

    # Flatten exactly like torch's x.view(-1, 3*32*32) (row-major).
    x2d = x_nchw.reshape(B, IN_FEATURES)

    # Fuse fc1 and fc2 (valid: the module has no nonlinearity between them).
    w_fused = jnp.dot(w1, w2)            # (3072, M) f32
    b_fused = jnp.dot(b1, w2) + b2       # (1, M)    f32

    # Lane-pad weights/bias/output to a multiple of 128 for unmasked stores.
    lane_pad = _round_up(max(M, LANE), LANE)
    w_pad = jnp.zeros((IN_FEATURES, lane_pad), jnp.float32).at[:, :M].set(w_fused)
    w_pad = w_pad.astype(jnp.bfloat16)
    b_pad = jnp.full((1, lane_pad), NEG_LARGE, jnp.float32).at[:, :M].set(b_fused)

    # Pad the batch (sublane) dim and tile it.
    b_padded = _round_up(B, 16)          # bf16 sublane packing -> multiple of 16
    tb = min(256, b_padded)              # 256-row tiles: ~1.5 MiB bf16 x per buf
    b_padded = _round_up(b_padded, tb)
    x_pad = x2d if b_padded == B else jnp.pad(x2d, ((0, b_padded - B), (0, 0)))
    x_pad = x_pad.astype(jnp.bfloat16)

    grid = (b_padded // tb,)
    kernel = _gatenet_softmax_kernel if sm else _gatenet_logits_kernel

    cost = pl.CostEstimate(
        flops=2 * b_padded * IN_FEATURES * lane_pad,
        transcendentals=(b_padded * lane_pad + b_padded) if sm else 0,
        bytes_accessed=(b_padded * IN_FEATURES * 2        # x (bf16)
                        + IN_FEATURES * lane_pad * 2      # fused weight (bf16)
                        + lane_pad * 4                    # bias (f32)
                        + b_padded * lane_pad * 4),       # output (f32)
    )

    out = pl.pallas_call(
        kernel,
        out_shape=jax.ShapeDtypeStruct((b_padded, lane_pad), jnp.float32),
        grid=grid,
        in_specs=[
            pl.BlockSpec((tb, IN_FEATURES), lambda i: (i, 0)),       # x tile
            pl.BlockSpec((IN_FEATURES, lane_pad), lambda i: (0, 0)),  # weight (resident)
            pl.BlockSpec((1, lane_pad), lambda i: (0, 0)),            # bias (resident)
        ],
        out_specs=pl.BlockSpec((tb, lane_pad), lambda i: (i, 0)),
        compiler_params=pltpu.CompilerParams(
            dimension_semantics=("parallel",),        # megacore sharding on v7x
            vmem_limit_bytes=32 * 1024 * 1024,        # safe on v5e (16 MiB default) and v7x
        ),
        cost_estimate=cost,
    )(x_pad, w_pad, b_pad)

    # Strip batch and lane padding.
    return out[:B, :M]


def init_params(key, model_nums):
    """Deterministic synthetic init with PyTorch Linear-style uniform bounds."""
    k1, k2, k3, k4 = jax.random.split(key, 4)
    bound1 = 1.0 / jnp.sqrt(IN_FEATURES)
    bound2 = 1.0 / jnp.sqrt(HIDDEN)
    # Stored pre-transposed: (in, out) so the forward does x @ w.
    w1 = jax.random.uniform(k1, (IN_FEATURES, HIDDEN), jnp.float32, -bound1, bound1)
    b1 = jax.random.uniform(k2, (1, HIDDEN), jnp.float32, -bound1, bound1)
    w2 = jax.random.uniform(k3, (HIDDEN, model_nums), jnp.float32, -bound2, bound2)
    b2 = jax.random.uniform(k4, (1, model_nums), jnp.float32, -bound2, bound2)
    return w1, b1, w2, b2


if __name__ == "__main__":
    key = jax.random.PRNGKey(0)
    k_x, k_p = jax.random.split(key)

    batch = 2
    model_nums = 4

    # NCHW input, like the PyTorch module expects before .view
    x = jax.random.normal(k_x, (batch, 3, 32, 32), jnp.float32)
    w1, b1, w2, b2 = init_params(k_p, model_nums)

    # sm=1 path (softmax probabilities) and sm=0 path (raw logits).
    probs = jax.block_until_ready(gatenet_forward(x, w1, b1, w2, b2, sm=1))
    logits = jax.block_until_ready(gatenet_forward(x, w1, b1, w2, b2, sm=0))

    # Pure-JAX f32 reference of the exact module semantics.
    x2d = x.reshape(batch, -1)
    ref_logits = (x2d @ w1 + b1) @ w2 + b2
    ref_probs = jax.nn.softmax(ref_logits, axis=1)

    assert probs.shape == (batch, model_nums)
    assert logits.shape == (batch, model_nums)
    # bf16 MXU operands + approx reciprocal -> loose tolerance vs f32 reference.
    assert jnp.allclose(probs, ref_probs, atol=2e-2), "softmax mismatch vs reference"
    assert jnp.allclose(jnp.sum(probs, axis=1), 1.0, atol=1e-2), "rows must sum to ~1"
    assert jnp.allclose(logits, ref_logits, atol=3e-2), "logits mismatch vs reference"

    print("KERNEL_OK")
</pallas_src>

<mosaic_0001>
module attributes {stable_mosaic.version = 11 : i64} {
  func.func @_gatenet_softmax_kernel(%arg0: i32, %arg1: memref<16x3072xbf16, #tpu.memory_space<vmem>>, %arg2: memref<3072x128xbf16, #tpu.memory_space<vmem>>, %arg3: memref<1x128xf32, #tpu.memory_space<vmem>>, %arg4: memref<16x128xf32, #tpu.memory_space<vmem>>) attributes {dimension_semantics = [#tpu.dimension_semantics<parallel>], iteration_bounds = array<i64: 1>, scalar_prefetch = 0 : i64, scratch_operands = 0 : i64, tpu.core_type = #tpu.core_type<tc>, window_params = [{transform_indices = @transform_0, window_bounds = array<i64: 16, 3072>}, {pipeline_mode = #tpu.pipeline_mode<synchronous>, transform_indices = @transform_1, window_bounds = array<i64: 3072, 128>}, {pipeline_mode = #tpu.pipeline_mode<synchronous>, transform_indices = @transform_2, window_bounds = array<i64: 1, 128>}, {transform_indices = @transform_3, window_bounds = array<i64: 16, 128>}]} {
    %c0 = arith.constant 0 : index
    %c0_0 = arith.constant 0 : index
    %0 = vector.load %arg1[%c0, %c0_0] : memref<16x3072xbf16, #tpu.memory_space<vmem>>, vector<16x3072xbf16>
    %c0_1 = arith.constant 0 : index
    %c0_2 = arith.constant 0 : index
    %1 = vector.load %arg2[%c0_1, %c0_2] : memref<3072x128xbf16, #tpu.memory_space<vmem>>, vector<3072x128xbf16>
    %cst = arith.constant dense<0.000000e+00> : vector<16x128xf32>
    %2 = tpu.matmul %0, %1, %cst {dimension_numbers = #tpu.dot_dimension_numbers<[1], [0], [0], [1], [0, 0, 1, 1], [], []>} : vector<16x3072xbf16>, vector<3072x128xbf16>, vector<16x128xf32> -> vector<16x128xf32>
    %c0_3 = arith.constant 0 : index
    %c0_4 = arith.constant 0 : index
    %3 = vector.load %arg3[%c0_3, %c0_4] : memref<1x128xf32, #tpu.memory_space<vmem>>, vector<1x128xf32>
    %4 = vector.broadcast %3 : vector<1x128xf32> to vector<16x128xf32>
    %5 = arith.addf %2, %4 : vector<16x128xf32>
    %cst_5 = arith.constant dense<0xFF800000> : vector<16xf32>
    %6 = vector.multi_reduction <maximumf>, %5, %cst_5 [1] : vector<16x128xf32> to vector<16xf32>
    %7 = vector.shape_cast %6 : vector<16xf32> to vector<16x1xf32>
    %8 = vector.broadcast %7 : vector<16x1xf32> to vector<16x128xf32>
    %9 = arith.subf %5, %8 : vector<16x128xf32>
    %10 = math.exp %9 : vector<16x128xf32>
    %cst_6 = arith.constant dense<0.000000e+00> : vector<16xf32>
    %11 = vector.multi_reduction <add>, %10, %cst_6 [1] : vector<16x128xf32> to vector<16xf32>
    %12 = vector.shape_cast %11 : vector<16xf32> to vector<16x1xf32>
    %13 = tpu.reciprocal %12 {approx = true} : vector<16x1xf32> -> vector<16x1xf32>
    %14 = vector.broadcast %13 : vector<16x1xf32> to vector<16x128xf32>
    %15 = arith.mulf %10, %14 : vector<16x128xf32>
    %c0_7 = arith.constant 0 : index
    %c0_8 = arith.constant 0 : index
    %16 = vector.load %arg4[%c0_7, %c0_8] : memref<16x128xf32, #tpu.memory_space<vmem>>, vector<16x128xf32>
    tpu.vector_store %arg4[%c0_7, %c0_8], %15 {strides = array<i32>} : memref<16x128xf32, #tpu.memory_space<vmem>>, vector<16x128xf32>,
    return
  }
  func.func @transform_0(%arg0: i32) -> (i32, i32) {
    %c0_i32 = arith.constant 0 : i32
    %c0_i32_0 = arith.constant 0 : i32
    return %arg0, %c0_i32 : i32, i32
  }
  func.func @transform_1(%arg0: i32) -> (i32, i32) {
    %c0_i32 = arith.constant 0 : i32
    %c0_i32_0 = arith.constant 0 : i32
    %c0_i32_1 = arith.constant 0 : i32
    return %c0_i32, %c0_i32_0 : i32, i32
  }
  func.func @transform_2(%arg0: i32) -> (i32, i32) {
    %c0_i32 = arith.constant 0 : i32
    %c0_i32_0 = arith.constant 0 : i32
    %c0_i32_1 = arith.constant 0 : i32
    return %c0_i32, %c0_i32_0 : i32, i32
  }
  func.func @transform_3(%arg0: i32) -> (i32, i32) {
    %c0_i32 = arith.constant 0 : i32
    %c0_i32_0 = arith.constant 0 : i32
    return %arg0, %c0_i32 : i32, i32
  }
}

</mosaic_0001>

<bundles_post_ra>
// kernel: tpu_custom_call.1
= control target key start
LH: loop header
LB: loop body
LE: loop exit
PB: predicated region body
PF: predicated region fallthrough
CT: control target
= control target key end

     0   :  { %8 = vsyncpa [#allocation3], 0  ;;  %s3324_s0 = inlined_call_operand.hbm [shape: bf16[16,3072], index: 0, kind: input, shape index: {}]   ;;  %s3325_s1 = inlined_call_operand.hbm [shape: bf16[3072,128], index: 1, kind: input, shape index: {}]   ;;  %s3326_s2 = inlined_call_operand.vmem [shape: f32[1,128], index: 2, kind: input, shape index: {}]   ;;  %s3327_s3 = inlined_call_operand.hbm [shape: f32[16,128], index: 3, kind: output, shape index: {}]  }
   0x1   :  { %9 = vsyncpa [#allocation6], 0 }
   0x2   :  { %10 = vsyncpa [#allocation4], 0  ;;  %s15_s14 = sshll.u32 %s3324_s0, 4  ;;  %s3283_s15 = smov [#allocation2]   ;;  %s16_s14 = int_to_ptr.hbm [resolvable:$true] %s15_s14 }
   0x3   :  { %s17_s16 = sshll.u32 %s3283_s15, 4  ;;  %s28_s19 = sshll.u32 %s3325_s1, 4  ;;  %s18_s16 = int_to_ptr.vmem [resolvable:$true] %s17_s16  ;;  %s29_s19 = int_to_ptr.hbm [resolvable:$true] %s28_s19 }
   0x4   :  { %s3284_s20 = smov 1536   ;;  %s3285_s21 = smov 96  }
   0x5   :  { %23 = dma.hbm_to_vmem [thread:$0]  %s16_s14, 3072, %s18_s16, [#allocation3], %s3284_s20, %s3284_s20, %s3285_s21  }
   0x6   :  { %s3286_s22 = smov [#allocation5]   ;;  %s3287_s24 = smov 64  }
   0x7   :  { %s30_s23 = sshll.u32 %s3286_s22, 4  ;;  %s3288_s25 = smov 4   ;;  %s31_s23 = int_to_ptr.vmem [resolvable:$true] %s30_s23 }
   0x8   :  { %36 = dma.hbm_to_vmem [thread:$0]  %s29_s19, 24576, %s31_s23, [#allocation6], %s3287_s24, %s3287_s24, %s3288_s25  }
   0x9   :  { %3277 = dma.done.wait [#allocation3], 3072  }
   0xa   :  { %3278 = vsyncadd [#allocation3], 4294964224 }
   0xb   :  { %3279 = dma.done.wait [#allocation6], 24576  }
   0xc   :  { %3280 = vsyncadd [#allocation6], 4294942720  ;;  %v3002_v0 = vld [vmem:[#allocation5 + $0x38] sm:$0xff]  ;;  %v3001_v4 = vld [vmem:[#allocation5 + $0x30] sm:$0xff]  ;;  %s2093_s29 = sshll.u32 %s3327_s3, 4  ;;  %s3290_s30 = smov 128   ;;  %s2094_s29 = int_to_ptr.hbm [resolvable:$true] %s2093_s29 }
   0xd   :  { %v3010_v1 = vld [vmem:[#allocation5 + $0x78] sm:$0xff]  ;;  %1731 = vmatpush.bf16.msra.mxu0 %v3002_v0  ;;  %v3009_v5 = vld [vmem:[#allocation5 + $0x70] sm:$0xff]  ;;  %v3000_v8 = vld [vmem:[#allocation5 + $0x28] sm:$0xff]  ;;  %s3291_s4 = smov 8  }
   0xe   :  { %v3018_v2 = vld [vmem:[#allocation5 + $0xb8] sm:$0xff]  ;;  %1745 = vmatpush.bf16.msra.mxu1 %v3010_v1  ;;  %v3017_v6 = vld [vmem:[#allocation5 + $0xb0] sm:$0xff]  ;;  %v3008_v9 = vld [vmem:[#allocation5 + $0x68] sm:$0xff] }
   0xf   :  { %v3026_v3 = vld [vmem:[#allocation5 + $0xf8] sm:$0xff]  ;;  %1759 = vmatpush.bf16.msra.mxu2 %v3018_v2  ;;  %v3025_v7 = vld [vmem:[#allocation5 + $0xf0] sm:$0xff]  ;;  %v3016_v10 = vld [vmem:[#allocation5 + $0xa8] sm:$0xff] }
  0x10   :  { %1773 = vmatpush.bf16.msra.mxu3 %v3026_v3  ;;  %v3024_v11 = vld [vmem:[#allocation5 + $0xe8] sm:$0xff]  ;;  %v2999_v12 = vld [vmem:[#allocation5 + $0x20] sm:$0xff]  ;;  %v2998_v16 = vld [vmem:[#allocation5 + $0x18] sm:$0xff] }
  0x11   :  { %1732 = vmatpush.bf16.msra.mxu0 %v3001_v4  ;;  %v3007_v13 = vld [vmem:[#allocation5 + $0x60] sm:$0xff]  ;;  %v3006_v17 = vld [vmem:[#allocation5 + $0x58] sm:$0xff]  ;;  %v2997_v20 = vld [vmem:[#allocation5 + $0x10] sm:$0xff] }
  0x12   :  { %1746 = vmatpush.bf16.msra.mxu1 %v3009_v5  ;;  %v3015_v14 = vld [vmem:[#allocation5 + $0xa0] sm:$0xff]  ;;  %v3014_v18 = vld [vmem:[#allocation5 + $0x98] sm:$0xff]  ;;  %v3005_v21 = vld [vmem:[#allocation5 + $0x50] sm:$0xff] }
  0x13   :  { %1760 = vmatpush.bf16.msra.mxu2 %v3017_v6  ;;  %v3023_v15 = vld [vmem:[#allocation5 + $0xe0] sm:$0xff]  ;;  %v3022_v19 = vld [vmem:[#allocation5 + $0xd8] sm:$0xff]  ;;  %v3013_v22 = vld [vmem:[#allocation5 + $0x90] sm:$0xff] }
  0x14   :  { %1774 = vmatpush.bf16.msra.mxu3 %v3025_v7  ;;  %v3021_v23 = vld [vmem:[#allocation5 + $0xd0] sm:$0xff]  ;;  %v2996_v24 = vld [vmem:[#allocation5 + $0x8] sm:$0xff]  ;;  %v2995_v28 = vld [vmem:[#allocation5] sm:$0xff] }
  0x15   :  { %1733 = vmatpush.bf16.msra.mxu0 %v3000_v8  ;;  %v3004_v25 = vld [vmem:[#allocation5 + $0x48] sm:$0xff]  ;;  %v3003_v29 = vld [vmem:[#allocation5 + $0x40] sm:$0xff]  ;;  %v3034_v32 = vld [vmem:[#allocation5 + $0x138] sm:$0xff] }
  0x16   :  { %1747 = vmatpush.bf16.msra.mxu1 %v3008_v9  ;;  %v3012_v26 = vld [vmem:[#allocation5 + $0x88] sm:$0xff]  ;;  %v3011_v30 = vld [vmem:[#allocation5 + $0x80] sm:$0xff]  ;;  %v3042_v33 = vld [vmem:[#allocation5 + $0x178] sm:$0xff] }
  0x17   :  { %1761 = vmatpush.bf16.msra.mxu2 %v3016_v10  ;;  %v3020_v27 = vld [vmem:[#allocation5 + $0xc8] sm:$0xff]  ;;  %v3019_v31 = vld [vmem:[#allocation5 + $0xc0] sm:$0xff]  ;;  %v3050_v42 = vld [vmem:[#allocation5 + $0x1b8] sm:$0xff] }
  0x18   :  { %1775 = vmatpush.bf16.msra.mxu3 %v3024_v11  ;;  %v2109_v34 = vld [vmem:[#allocation2] sm:$0xf]  ;;  %v2117_v36 = vld [vmem:[#allocation2 + $0x8] sm:$0xf]  ;;  %v2971_v38 = vld [vmem:[#allocation2 + $0x4] sm:$0xf] }
  0x19   :  { %1734 = vmatpush.bf16.msra.mxu0 %v2999_v12  ;;  %v2983_v35 = vld [vmem:[#allocation2 + $0x5c] sm:$0xf0]  ;;  %v2984_v37 = vld [vmem:[#allocation2 + $0x64] sm:$0xf0]  ;;  %v2111_v39 = vld [vmem:[#allocation2 + $0x60] sm:$0xf0] }
  0x1a   :  { %1748 = vmatpush.bf16.msra.mxu1 %v3007_v13  ;;  %v2972_v40 = vld [vmem:[#allocation2 + $0xc] sm:$0xf]  ;;  %v3058_v43 = vld [vmem:[#allocation5 + $0x1f8] sm:$0xff]  ;;  %v2110_v44 = vor.u32 %v2983_v35, %v2109_v34  ;;  %v2118_v45 = vor.u32 %v2984_v37, %v2117_v36  ;;  %v2114_v46 = vor.u32 %v2971_v38, %v2111_v39  ;;  %v3033_v48 = vld [vmem:[#allocation5 + $0x130] sm:$0xff] }
  0x1b   :  { %1762 = vmatpush.bf16.msra.mxu2 %v3015_v14  ;;  %v2119_v41 = vld [vmem:[#allocation2 + $0x68] sm:$0xf0]  ;;  %v3041_v49 = vld [vmem:[#allocation5 + $0x170] sm:$0xff]  ;;  %v3031_v56 = vld [vmem:[#allocation5 + $0x120] sm:$0xff] }
  0x1c   :  { %1776 = vmatpush.bf16.msra.mxu3 %v3023_v15  ;;  %v2122_v47 = vor.u32 %v2972_v40, %v2119_v41  ;;  %v3049_v50 = vld [vmem:[#allocation5 + $0x1b0] sm:$0xff]  ;;  %v3032_v52 = vld [vmem:[#allocation5 + $0x128] sm:$0xff]  ;;  %v3039_v57 = vld [vmem:[#allocation5 + $0x160] sm:$0xff] }
  0x1d   :  { %1735 = vmatpush.bf16.msra.mxu0 %v2998_v16  ;;  %v3057_v51 = vld [vmem:[#allocation5 + $0x1f0] sm:$0xff]  ;;  %v3040_v53 = vld [vmem:[#allocation5 + $0x168] sm:$0xff]  ;;  %v3047_v58 = vld [vmem:[#allocation5 + $0x1a0] sm:$0xff] }
  0x1e   :  { %1749 = vmatpush.bf16.msra.mxu1 %v3006_v17  ;;  %v3048_v54 = vld [vmem:[#allocation5 + $0x1a8] sm:$0xff]  ;;  %v3055_v59 = vld [vmem:[#allocation5 + $0x1e0] sm:$0xff]  ;;  %v3030_v60 = vld [vmem:[#allocation5 + $0x118] sm:$0xff] }
  0x1f   :  { %1763 = vmatpush.bf16.msra.mxu2 %v3014_v18  ;;  %v3056_v55 = vld [vmem:[#allocation5 + $0x1e8] sm:$0xff]  ;;  %v3038_v61 = vld [vmem:[#allocation5 + $0x158] sm:$0xff]  ;;  %v3029_v0 = vld [vmem:[#allocation5 + $0x110] sm:$0xff] }
  0x20   :  { %1777 = vmatpush.bf16.msra.mxu3 %v3022_v19  ;;  %v3046_v62 = vld [vmem:[#allocation5 + $0x198] sm:$0xff]  ;;  %v3037_v1 = vld [vmem:[#allocation5 + $0x150] sm:$0xff]  ;;  %v3028_v4 = vld [vmem:[#allocation5 + $0x108] sm:$0xff] }
  0x21   :  { %1736 = vmatpush.bf16.msra.mxu0 %v2997_v20  ;;  %v3054_v63 = vld [vmem:[#allocation5 + $0x1d8] sm:$0xff]  ;;  %v3045_v2 = vld [vmem:[#allocation5 + $0x190] sm:$0xff]  ;;  %v3036_v5 = vld [vmem:[#allocation5 + $0x148] sm:$0xff] }
  0x22   :  { %1750 = vmatpush.bf16.msra.mxu1 %v3005_v21  ;;  %v3053_v3 = vld [vmem:[#allocation5 + $0x1d0] sm:$0xff]  ;;  %v3044_v6 = vld [vmem:[#allocation5 + $0x188] sm:$0xff]  ;;  %v3027_v8 = vld [vmem:[#allocation5 + $0x100] sm:$0xff] }
  0x23   :  { %1764 = vmatpush.bf16.msra.mxu2 %v3013_v22  ;;  %v3052_v7 = vld [vmem:[#allocation5 + $0x1c8] sm:$0xff]  ;;  %v3035_v9 = vld [vmem:[#allocation5 + $0x140] sm:$0xff]  ;;  %v3066_v12 = vld [vmem:[#allocation5 + $0x238] sm:$0xff] }
  0x24   :  { %1778 = vmatpush.bf16.msra.mxu3 %v3021_v23  ;;  %v3043_v10 = vld [vmem:[#allocation5 + $0x180] sm:$0xff]  ;;  %v3074_v13 = vld [vmem:[#allocation5 + $0x278] sm:$0xff]  ;;  %v2125_v14 = vld [vmem:[#allocation2 + $0x10] sm:$0xf] }
  0x25   :  { %1737 = vmatpush.bf16.msra.mxu0 %v2996_v24  ;;  %v3051_v11 = vld [vmem:[#allocation5 + $0x1c0] sm:$0xff]  ;;  %v2985_v15 = vld [vmem:[#allocation2 + $0x6c] sm:$0xf0]  ;;  %v2133_v16 = vld [vmem:[#allocation2 + $0x18] sm:$0xf] }
  0x26   :  { %1751 = vmatpush.bf16.msra.mxu1 %v3004_v25  ;;  %v2986_v17 = vld [vmem:[#allocation2 + $0x74] sm:$0xf0]  ;;  %v2973_v18 = vld [vmem:[#allocation2 + $0x14] sm:$0xf]  ;;  %v2974_v20 = vld [vmem:[#allocation2 + $0x1c] sm:$0xf]  ;;  %v2126_v24 = vor.u32 %v2985_v15, %v2125_v14 }
  0x27   :  { %1765 = vmatpush.bf16.msra.mxu2 %v3012_v26  ;;  %v2127_v19 = vld [vmem:[#allocation2 + $0x70] sm:$0xf0]  ;;  %v2135_v21 = vld [vmem:[#allocation2 + $0x78] sm:$0xf0]  ;;  %v2134_v25 = vor.u32 %v2986_v17, %v2133_v16  ;;  %v3080_v34 = vld [vmem:[#allocation5 + $0x2a8] sm:$0xff] }
  0x28   :  { %1779 = vmatpush.bf16.msra.mxu3 %v3020_v27  ;;  %v3082_v22 = vld [vmem:[#allocation5 + $0x2b8] sm:$0xff]  ;;  %v2130_v26 = vor.u32 %v2973_v18, %v2127_v19  ;;  %v2138_v27 = vor.u32 %v2974_v20, %v2135_v21  ;;  %v3088_v35 = vld [vmem:[#allocation5 + $0x2e8] sm:$0xff]  ;;  %v3063_v36 = vld [vmem:[#allocation5 + $0x220] sm:$0xff] }
  0x29   :  { %1738 = vmatpush.bf16.msra.mxu0 %v2995_v28  ;;  %v3090_v23 = vld [vmem:[#allocation5 + $0x2f8] sm:$0xff]  ;;  %v3065_v28 = vld [vmem:[#allocation5 + $0x230] sm:$0xff]  ;;  %v3071_v37 = vld [vmem:[#allocation5 + $0x260] sm:$0xff] }
  0x2a   :  { %1752 = vmatpush.bf16.msra.mxu1 %v3003_v29  ;;  %v3073_v29 = vld [vmem:[#allocation5 + $0x270] sm:$0xff]  ;;  %v3079_v38 = vld [vmem:[#allocation5 + $0x2a0] sm:$0xff]  ;;  %v3062_v40 = vld [vmem:[#allocation5 + $0x218] sm:$0xff] }
  0x2b   :  { %1766 = vmatpush.bf16.msra.mxu2 %v3011_v30  ;;  %v3081_v30 = vld [vmem:[#allocation5 + $0x2b0] sm:$0xff]  ;;  %v3087_v39 = vld [vmem:[#allocation5 + $0x2e0] sm:$0xff]  ;;  %v3070_v41 = vld [vmem:[#allocation5 + $0x258] sm:$0xff] }
  0x2c   :  { %1780 = vmatpush.bf16.msra.mxu3 %v3019_v31  ;;  %1739 = vmatmul.bf16.vlgmr.msra.gmra.mxu0 %v2110_v44  ;;  %v3089_v31 = vld [vmem:[#allocation5 + $0x2f0] sm:$0xff]  ;;  %v3112_v14 = vld [vmem:[#allocation5 + $0x3a8] sm:$0xff]  ;;  %v3095_v16 = vld [vmem:[#allocation5 + $0x320] sm:$0xff] }
  0x2d   :  { %1787 = vmatpush.bf16.msrb.mxu0 %v3034_v32  ;;  %1753 = vmatmul.bf16.vlgmr.msra.gmra.mxu1 %v2114_v46  ;;  %v3064_v32 = vld [vmem:[#allocation5 + $0x228] sm:$0xff]  ;;  %v3061_v44 = vld [vmem:[#allocation5 + $0x210] sm:$0xff]  ;;  %v3103_v17 = vld [vmem:[#allocation5 + $0x360] sm:$0xff] }
  0x2e   :  { %1801 = vmatpush.bf16.msrb.mxu1 %v3042_v33  ;;  %1767 = vmatmul.bf16.vlgmr.msra.gmra.mxu2 %v2118_v45  ;;  %v3072_v33 = vld [vmem:[#allocation5 + $0x268] sm:$0xff]  ;;  %v3069_v45 = vld [vmem:[#allocation5 + $0x250] sm:$0xff]  ;;  %v3111_v18 = vld [vmem:[#allocation5 + $0x3a0] sm:$0xff] }
  0x2f   :  { %1815 = vmatpush.bf16.msrb.mxu2 %v3050_v42  ;;  %1781 = vmatmul.bf16.vlgmr.msra.gmra.mxu3 %v2122_v47  ;;  %v3078_v42 = vld [vmem:[#allocation5 + $0x298] sm:$0xff]  ;;  %v3077_v46 = vld [vmem:[#allocation5 + $0x290] sm:$0xff]  ;;  %v3120_v15 = vld [vmem:[#allocation5 + $0x3e8] sm:$0xff] }
  0x30   :  { %1829 = vmatpush.bf16.msrb.mxu3 %v3058_v43  ;;  %v3086_v43 = vld [vmem:[#allocation5 + $0x2d8] sm:$0xff]  ;;  %v3085_v47 = vld [vmem:[#allocation5 + $0x2d0] sm:$0xff]  ;;  %v3119_v19 = vld [vmem:[#allocation5 + $0x3e0] sm:$0xff] }
  0x31   :  { %1788 = vmatpush.bf16.msrb.mxu0 %v3033_v48  ;;  %v3060_v48 = vld [vmem:[#allocation5 + $0x208] sm:$0xff]  ;;  %v3094_v20 = vld [vmem:[#allocation5 + $0x318] sm:$0xff] }
  0x32   :  { %1802 = vmatpush.bf16.msrb.mxu1 %v3041_v49  ;;  %v3068_v49 = vld [vmem:[#allocation5 + $0x248] sm:$0xff]  ;;  %v3102_v21 = vld [vmem:[#allocation5 + $0x358] sm:$0xff] }
  0x33   :  { %1816 = vmatpush.bf16.msrb.mxu2 %v3049_v50  ;;  %v3076_v50 = vld [vmem:[#allocation5 + $0x288] sm:$0xff] }
  0x34   :  { %1830 = vmatpush.bf16.msrb.mxu3 %v3057_v51  ;;  %v3084_v51 = vld [vmem:[#allocation5 + $0x2c8] sm:$0xff] }
  0x35   :  { %1789 = vmatpush.bf16.msrb.mxu0 %v3032_v52  ;;  %v3059_v52 = vld [vmem:[#allocation5 + $0x200] sm:$0xff] }
  0x36   :  { %1803 = vmatpush.bf16.msrb.mxu1 %v3040_v53  ;;  %v3067_v53 = vld [vmem:[#allocation5 + $0x240] sm:$0xff] }
  0x37   :  { %1817 = vmatpush.bf16.msrb.mxu2 %v3048_v54  ;;  %v3075_v54 = vld [vmem:[#allocation5 + $0x280] sm:$0xff] }
  0x38   :  { %1831 = vmatpush.bf16.msrb.mxu3 %v3056_v55  ;;  %v3083_v55 = vld [vmem:[#allocation5 + $0x2c0] sm:$0xff] }
  0x39   :  { %1790 = vmatpush.bf16.msrb.mxu0 %v3031_v56  ;;  %v3098_v56 = vld [vmem:[#allocation5 + $0x338] sm:$0xff] }
  0x3a   :  { %1804 = vmatpush.bf16.msrb.mxu1 %v3039_v57  ;;  %v3106_v57 = vld [vmem:[#allocation5 + $0x378] sm:$0xff] }
  0x3b   :  { %1818 = vmatpush.bf16.msrb.mxu2 %v3047_v58  ;;  %v2141_v58 = vld [vmem:[#allocation2 + $0x20] sm:$0xf] }
  0x3c   :  { %1832 = vmatpush.bf16.msrb.mxu3 %v3055_v59  ;;  %v2987_v59 = vld [vmem:[#allocation2 + $0x7c] sm:$0xf0] }
  0x3d   :  { %1791 = vmatpush.bf16.msrb.mxu0 %v3030_v60  ;;  %v2149_v60 = vld [vmem:[#allocation2 + $0x28] sm:$0xf] }
  0x3e   :  { %1805 = vmatpush.bf16.msrb.mxu1 %v3038_v61  ;;  %v2988_v61 = vld [vmem:[#allocation2 + $0x84] sm:$0xf0] }
  0x3f   :  { %1819 = vmatpush.bf16.msrb.mxu2 %v3046_v62  ;;  %v2975_v62 = vld [vmem:[#allocation2 + $0x24] sm:$0xf] }
  0x40   :  { %1833 = vmatpush.bf16.msrb.mxu3 %v3054_v63  ;;  %v2143_v63 = vld [vmem:[#allocation2 + $0x80] sm:$0xf0] }
  0x41   :  { %1792 = vmatpush.bf16.msrb.mxu0 %v3029_v0  ;;  %v2976_v0 = vld [vmem:[#allocation2 + $0x2c] sm:$0xf] }
  0x42   :  { %1806 = vmatpush.bf16.msrb.mxu1 %v3037_v1  ;;  %v2151_v1 = vld [vmem:[#allocation2 + $0x88] sm:$0xf0] }
  0x43   :  { %1820 = vmatpush.bf16.msrb.mxu2 %v3045_v2  ;;  %v3114_v2 = vld [vmem:[#allocation5 + $0x3b8] sm:$0xff] }
  0x44   :  { %1834 = vmatpush.bf16.msrb.mxu3 %v3053_v3  ;;  %v3122_v3 = vld [vmem:[#allocation5 + $0x3f8] sm:$0xff] }
  0x45   :  { %1793 = vmatpush.bf16.msrb.mxu0 %v3028_v4  ;;  %v2142_v4 = vor.u32 %v2987_v59, %v2141_v58  ;;  %v3144_v58 = vld [vmem:[#allocation5 + $0x4a8] sm:$0xff] }
  0x46   :  { %1807 = vmatpush.bf16.msrb.mxu1 %v3036_v5  ;;  %v2150_v5 = vor.u32 %v2988_v61, %v2149_v60  ;;  %v3152_v59 = vld [vmem:[#allocation5 + $0x4e8] sm:$0xff]  ;;  %v3127_v60 = vld [vmem:[#allocation5 + $0x420] sm:$0xff] }
  0x47   :  { %1821 = vmatpush.bf16.msrb.mxu2 %v3044_v6  ;;  %v2146_v6 = vor.u32 %v2975_v62, %v2143_v63  ;;  %v3135_v61 = vld [vmem:[#allocation5 + $0x460] sm:$0xff] }
  0x48   :  { %1835 = vmatpush.bf16.msrb.mxu3 %v3052_v7  ;;  %v2154_v7 = vor.u32 %v2976_v0, %v2151_v1  ;;  %v3143_v62 = vld [vmem:[#allocation5 + $0x4a0] sm:$0xff]  ;;  %v3126_v0 = vld [vmem:[#allocation5 + $0x418] sm:$0xff] }
  0x49   :  { %1794 = vmatpush.bf16.msrb.mxu0 %v3027_v8  ;;  %v3097_v8 = vld [vmem:[#allocation5 + $0x330] sm:$0xff]  ;;  %v3151_v63 = vld [vmem:[#allocation5 + $0x4e0] sm:$0xff]  ;;  %v3134_v1 = vld [vmem:[#allocation5 + $0x458] sm:$0xff] }
  0x4a   :  { %1808 = vmatpush.bf16.msrb.mxu1 %v3035_v9  ;;  %v3105_v9 = vld [vmem:[#allocation5 + $0x370] sm:$0xff] }
  0x4b   :  { %1822 = vmatpush.bf16.msrb.mxu2 %v3043_v10  ;;  %v3113_v10 = vld [vmem:[#allocation5 + $0x3b0] sm:$0xff] }
  0x4c   :  { %1836 = vmatpush.bf16.msrb.mxu3 %v3051_v11  ;;  %1795 = vmatmul.bf16.vlgmr.msrb.gmra.mxu0 %v2126_v24  ;;  %v3121_v11 = vld [vmem:[#allocation5 + $0x3f0] sm:$0xff] }
  0x4d   :  { %1843 = vmatpush.bf16.msra.mxu0 %v3066_v12  ;;  %1809 = vmatmul.bf16.vlgmr.msrb.gmra.mxu1 %v2130_v26  ;;  %v3096_v12 = vld [vmem:[#allocation5 + $0x328] sm:$0xff]  ;;  %v3093_v24 = vld [vmem:[#allocation5 + $0x310] sm:$0xff] }
  0x4e   :  { %1857 = vmatpush.bf16.msra.mxu1 %v3074_v13  ;;  %1823 = vmatmul.bf16.vlgmr.msrb.gmra.mxu2 %v2134_v25  ;;  %v3104_v13 = vld [vmem:[#allocation5 + $0x368] sm:$0xff]  ;;  %v3101_v25 = vld [vmem:[#allocation5 + $0x350] sm:$0xff] }
  0x4f   :  { %1871 = vmatpush.bf16.msra.mxu2 %v3082_v22  ;;  %1837 = vmatmul.bf16.vlgmr.msrb.gmra.mxu3 %v2138_v27  ;;  %v3110_v22 = vld [vmem:[#allocation5 + $0x398] sm:$0xff]  ;;  %v3109_v26 = vld [vmem:[#allocation5 + $0x390] sm:$0xff] }
  0x50   :  { %1885 = vmatpush.bf16.msra.mxu3 %v3090_v23  ;;  %v3118_v23 = vld [vmem:[#allocation5 + $0x3d8] sm:$0xff]  ;;  %v3117_v27 = vld [vmem:[#allocation5 + $0x3d0] sm:$0xff] }
  0x51   :  { %1844 = vmatpush.bf16.msra.mxu0 %v3065_v28  ;;  %v3092_v28 = vld [vmem:[#allocation5 + $0x308] sm:$0xff] }
  0x52   :  { %1858 = vmatpush.bf16.msra.mxu1 %v3073_v29  ;;  %v3100_v29 = vld [vmem:[#allocation5 + $0x348] sm:$0xff] }
  0x53   :  { %1872 = vmatpush.bf16.msra.mxu2 %v3081_v30  ;;  %v3108_v30 = vld [vmem:[#allocation5 + $0x388] sm:$0xff] }
  0x54   :  { %1886 = vmatpush.bf16.msra.mxu3 %v3089_v31  ;;  %v3116_v31 = vld [vmem:[#allocation5 + $0x3c8] sm:$0xff] }
  0x55   :  { %1845 = vmatpush.bf16.msra.mxu0 %v3064_v32  ;;  %v3091_v32 = vld [vmem:[#allocation5 + $0x300] sm:$0xff] }
  0x56   :  { %1859 = vmatpush.bf16.msra.mxu1 %v3072_v33  ;;  %v3099_v33 = vld [vmem:[#allocation5 + $0x340] sm:$0xff] }
  0x57   :  { %1873 = vmatpush.bf16.msra.mxu2 %v3080_v34  ;;  %v3107_v34 = vld [vmem:[#allocation5 + $0x380] sm:$0xff] }
  0x58   :  { %1887 = vmatpush.bf16.msra.mxu3 %v3088_v35  ;;  %v3115_v35 = vld [vmem:[#allocation5 + $0x3c0] sm:$0xff] }
  0x59   :  { %1846 = vmatpush.bf16.msra.mxu0 %v3063_v36  ;;  %v3130_v36 = vld [vmem:[#allocation5 + $0x438] sm:$0xff] }
  0x5a   :  { %1860 = vmatpush.bf16.msra.mxu1 %v3071_v37  ;;  %v3138_v37 = vld [vmem:[#allocation5 + $0x478] sm:$0xff] }
  0x5b   :  { %1874 = vmatpush.bf16.msra.mxu2 %v3079_v38  ;;  %v2157_v38 = vld [vmem:[#allocation2 + $0x30] sm:$0xf] }
  0x5c   :  { %1888 = vmatpush.bf16.msra.mxu3 %v3087_v39  ;;  %v2989_v39 = vld [vmem:[#allocation2 + $0x8c] sm:$0xf0] }
  0x5d   :  { %1847 = vmatpush.bf16.msra.mxu0 %v3062_v40  ;;  %v2165_v40 = vld [vmem:[#allocation2 + $0x38] sm:$0xf] }
  0x5e   :  { %1861 = vmatpush.bf16.msra.mxu1 %v3070_v41  ;;  %v2990_v41 = vld [vmem:[#allocation2 + $0x94] sm:$0xf0] }
  0x5f   :  { %1875 = vmatpush.bf16.msra.mxu2 %v3078_v42  ;;  %v2977_v42 = vld [vmem:[#allocation2 + $0x34] sm:$0xf] }
  0x60   :  { %1889 = vmatpush.bf16.msra.mxu3 %v3086_v43  ;;  %v2159_v43 = vld [vmem:[#allocation2 + $0x90] sm:$0xf0] }
  0x61   :  { %1848 = vmatpush.bf16.msra.mxu0 %v3061_v44  ;;  %v2978_v44 = vld [vmem:[#allocation2 + $0x3c] sm:$0xf] }
  0x62   :  { %1862 = vmatpush.bf16.msra.mxu1 %v3069_v45  ;;  %v2167_v45 = vld [vmem:[#allocation2 + $0x98] sm:$0xf0] }
  0x63   :  { %1876 = vmatpush.bf16.msra.mxu2 %v3077_v46  ;;  %v3146_v46 = vld [vmem:[#allocation5 + $0x4b8] sm:$0xff] }
  0x64   :  { %1890 = vmatpush.bf16.msra.mxu3 %v3085_v47  ;;  %v3154_v47 = vld [vmem:[#allocation5 + $0x4f8] sm:$0xff] }
  0x65   :  { %1849 = vmatpush.bf16.msra.mxu0 %v3060_v48  ;;  %v2158_v48 = vor.u32 %v2989_v39, %v2157_v38  ;;  %v3176_v38 = vld [vmem:[#allocation5 + $0x5a8] sm:$0xff] }
  0x66   :  { %1863 = vmatpush.bf16.msra.mxu1 %v3068_v49  ;;  %v2166_v49 = vor.u32 %v2990_v41, %v2165_v40  ;;  %v3184_v39 = vld [vmem:[#allocation5 + $0x5e8] sm:$0xff]  ;;  %v3159_v40 = vld [vmem:[#allocation5 + $0x520] sm:$0xff] }
  0x67   :  { %1877 = vmatpush.bf16.msra.mxu2 %v3076_v50  ;;  %v2162_v50 = vor.u32 %v2977_v42, %v2159_v43  ;;  %v3167_v41 = vld [vmem:[#allocation5 + $0x560] sm:$0xff] }
  0x68   :  { %1891 = vmatpush.bf16.msra.mxu3 %v3084_v51  ;;  %v2170_v51 = vor.u32 %v2978_v44, %v2167_v45  ;;  %v3175_v42 = vld [vmem:[#allocation5 + $0x5a0] sm:$0xff]  ;;  %v3158_v44 = vld [vmem:[#allocation5 + $0x518] sm:$0xff] }
  0x69   :  { %1850 = vmatpush.bf16.msra.mxu0 %v3059_v52  ;;  %v3129_v52 = vld [vmem:[#allocation5 + $0x430] sm:$0xff]  ;;  %v3183_v43 = vld [vmem:[#allocation5 + $0x5e0] sm:$0xff]  ;;  %v3166_v45 = vld [vmem:[#allocation5 + $0x558] sm:$0xff] }
  0x6a   :  { %1864 = vmatpush.bf16.msra.mxu1 %v3067_v53  ;;  %v3137_v53 = vld [vmem:[#allocation5 + $0x470] sm:$0xff] }
  0x6b   :  { %1878 = vmatpush.bf16.msra.mxu2 %v3075_v54  ;;  %v3145_v54 = vld [vmem:[#allocation5 + $0x4b0] sm:$0xff] }
  0x6c   :  { %1892 = vmatpush.bf16.msra.mxu3 %v3083_v55  ;;  %1851 = vmatmul.bf16.vlgmr.msra.gmra.mxu0 %v2142_v4  ;;  %v3153_v55 = vld [vmem:[#allocation5 + $0x4f0] sm:$0xff] }
  0x6d   :  { %1899 = vmatpush.bf16.msrb.mxu0 %v3098_v56  ;;  %1865 = vmatmul.bf16.vlgmr.msra.gmra.mxu1 %v2146_v6  ;;  %v3128_v56 = vld [vmem:[#allocation5 + $0x428] sm:$0xff]  ;;  %v3125_v4 = vld [vmem:[#allocation5 + $0x410] sm:$0xff] }
  0x6e   :  { %1913 = vmatpush.bf16.msrb.mxu1 %v3106_v57  ;;  %1879 = vmatmul.bf16.vlgmr.msra.gmra.mxu2 %v2150_v5  ;;  %v3136_v57 = vld [vmem:[#allocation5 + $0x468] sm:$0xff]  ;;  %v3133_v5 = vld [vmem:[#allocation5 + $0x450] sm:$0xff] }
  0x6f   :  { %1927 = vmatpush.bf16.msrb.mxu2 %v3114_v2  ;;  %1893 = vmatmul.bf16.vlgmr.msra.gmra.mxu3 %v2154_v7  ;;  %v3142_v2 = vld [vmem:[#allocation5 + $0x498] sm:$0xff]  ;;  %v3141_v6 = vld [vmem:[#allocation5 + $0x490] sm:$0xff] }
  0x70   :  { %1941 = vmatpush.bf16.msrb.mxu3 %v3122_v3  ;;  %v3150_v3 = vld [vmem:[#allocation5 + $0x4d8] sm:$0xff]  ;;  %v3149_v7 = vld [vmem:[#allocation5 + $0x4d0] sm:$0xff] }
  0x71   :  { %1900 = vmatpush.bf16.msrb.mxu0 %v3097_v8  ;;  %v3124_v8 = vld [vmem:[#allocation5 + $0x408] sm:$0xff] }
  0x72   :  { %1914 = vmatpush.bf16.msrb.mxu1 %v3105_v9  ;;  %v3132_v9 = vld [vmem:[#allocation5 + $0x448] sm:$0xff] }
  0x73   :  { %1928 = vmatpush.bf16.msrb.mxu2 %v3113_v10  ;;  %v3140_v10 = vld [vmem:[#allocation5 + $0x488] sm:$0xff] }
  0x74   :  { %1942 = vmatpush.bf16.msrb.mxu3 %v3121_v11  ;;  %v3148_v11 = vld [vmem:[#allocation5 + $0x4c8] sm:$0xff] }
  0x75   :  { %1901 = vmatpush.bf16.msrb.mxu0 %v3096_v12  ;;  %v3123_v12 = vld [vmem:[#allocation5 + $0x400] sm:$0xff] }
  0x76   :  { %1915 = vmatpush.bf16.msrb.mxu1 %v3104_v13  ;;  %v3131_v13 = vld [vmem:[#allocation5 + $0x440] sm:$0xff] }
  0x77   :  { %1929 = vmatpush.bf16.msrb.mxu2 %v3112_v14  ;;  %v3139_v14 = vld [vmem:[#allocation5 + $0x480] sm:$0xff] }
  0x78   :  { %1943 = vmatpush.bf16.msrb.mxu3 %v3120_v15  ;;  %v3147_v15 = vld [vmem:[#allocation5 + $0x4c0] sm:$0xff] }
  0x79   :  { %1902 = vmatpush.bf16.msrb.mxu0 %v3095_v16  ;;  %v3162_v16 = vld [vmem:[#allocation5 + $0x538] sm:$0xff] }
  0x7a   :  { %1916 = vmatpush.bf16.msrb.mxu1 %v3103_v17  ;;  %v3170_v17 = vld [vmem:[#allocation5 + $0x578] sm:$0xff] }
  0x7b   :  { %1930 = vmatpush.bf16.msrb.mxu2 %v3111_v18  ;;  %v2173_v18 = vld [vmem:[#allocation2 + $0x40] sm:$0xf] }
  0x7c   :  { %1944 = vmatpush.bf16.msrb.mxu3 %v3119_v19  ;;  %v2991_v19 = vld [vmem:[#allocation2 + $0x9c] sm:$0xf0] }
  0x7d   :  { %1903 = vmatpush.bf16.msrb.mxu0 %v3094_v20  ;;  %v2181_v20 = vld [vmem:[#allocation2 + $0x48] sm:$0xf] }
  0x7e   :  { %1917 = vmatpush.bf16.msrb.mxu1 %v3102_v21  ;;  %v2992_v21 = vld [vmem:[#allocation2 + $0xa4] sm:$0xf0] }
  0x7f   :  { %1931 = vmatpush.bf16.msrb.mxu2 %v3110_v22  ;;  %v2979_v22 = vld [vmem:[#allocation2 + $0x44] sm:$0xf] }
  0x80   :  { %1945 = vmatpush.bf16.msrb.mxu3 %v3118_v23  ;;  %v2175_v23 = vld [vmem:[#allocation2 + $0xa0] sm:$0xf0] }
  0x81   :  { %1904 = vmatpush.bf16.msrb.mxu0 %v3093_v24  ;;  %v2980_v24 = vld [vmem:[#allocation2 + $0x4c] sm:$0xf] }
  0x82   :  { %1918 = vmatpush.bf16.msrb.mxu1 %v3101_v25  ;;  %v2183_v25 = vld [vmem:[#allocation2 + $0xa8] sm:$0xf0] }
  0x83   :  { %1932 = vmatpush.bf16.msrb.mxu2 %v3109_v26  ;;  %v3178_v26 = vld [vmem:[#allocation5 + $0x5b8] sm:$0xff] }
  0x84   :  { %1946 = vmatpush.bf16.msrb.mxu3 %v3117_v27  ;;  %v3186_v27 = vld [vmem:[#allocation5 + $0x5f8] sm:$0xff] }
  0x85   :  { %1905 = vmatpush.bf16.msrb.mxu0 %v3092_v28  ;;  %v2174_v28 = vor.u32 %v2991_v19, %v2173_v18  ;;  %v3196_v18 = vld [vmem:[%s3326_s2] ss:$0 sm:$0xff]  ;;  %s3289_s2 = smov [#allocation7]  }
  0x86   :  { %1919 = vmatpush.bf16.msrb.mxu1 %v3100_v29  ;;  %v2182_v29 = vor.u32 %v2992_v21, %v2181_v20  ;;  %s2091_s26 = sshll.u32 %s3289_s2, 4  ;;  %s2092_s26 = int_to_ptr.vmem [resolvable:$true] %s2091_s26 }
  0x87   :  { %1933 = vmatpush.bf16.msrb.mxu2 %v3108_v30  ;;  %v2178_v30 = vor.u32 %v2979_v22, %v2175_v23 }
  0x88   :  { %1947 = vmatpush.bf16.msrb.mxu3 %v3116_v31  ;;  %v2186_v31 = vor.u32 %v2980_v24, %v2183_v25 }
  0x89   :  { %1906 = vmatpush.bf16.msrb.mxu0 %v3091_v32  ;;  %v3161_v32 = vld [vmem:[#allocation5 + $0x530] sm:$0xff] }
  0x8a   :  { %1920 = vmatpush.bf16.msrb.mxu1 %v3099_v33  ;;  %v3169_v33 = vld [vmem:[#allocation5 + $0x570] sm:$0xff] }
  0x8b   :  { %1934 = vmatpush.bf16.msrb.mxu2 %v3107_v34  ;;  %v3177_v34 = vld [vmem:[#allocation5 + $0x5b0] sm:$0xff] }
  0x8c   :  { %1948 = vmatpush.bf16.msrb.mxu3 %v3115_v35  ;;  %1907 = vmatmul.bf16.vlgmr.msrb.gmra.mxu0 %v2158_v48  ;;  %v3185_v35 = vld [vmem:[#allocation5 + $0x5f0] sm:$0xff] }
  0x8d   :  { %1955 = vmatpush.bf16.msra.mxu0 %v3130_v36  ;;  %1921 = vmatmul.bf16.vlgmr.msrb.gmra.mxu1 %v2162_v50  ;;  %v3160_v36 = vld [vmem:[#allocation5 + $0x528] sm:$0xff]  ;;  %v3157_v48 = vld [vmem:[#allocation5 + $0x510] sm:$0xff] }
  0x8e   :  { %1969 = vmatpush.bf16.msra.mxu1 %v3138_v37  ;;  %1935 = vmatmul.bf16.vlgmr.msrb.gmra.mxu2 %v2166_v49  ;;  %v3168_v37 = vld [vmem:[#allocation5 + $0x568] sm:$0xff]  ;;  %v3165_v49 = vld [vmem:[#allocation5 + $0x550] sm:$0xff] }
  0x8f   :  { %1983 = vmatpush.bf16.msra.mxu2 %v3146_v46  ;;  %1949 = vmatmul.bf16.vlgmr.msrb.gmra.mxu3 %v2170_v51  ;;  %v3174_v46 = vld [vmem:[#allocation5 + $0x598] sm:$0xff]  ;;  %v3173_v50 = vld [vmem:[#allocation5 + $0x590] sm:$0xff] }
  0x90   :  { %1997 = vmatpush.bf16.msra.mxu3 %v3154_v47  ;;  %v3182_v47 = vld [vmem:[#allocation5 + $0x5d8] sm:$0xff]  ;;  %v3181_v51 = vld [vmem:[#allocation5 + $0x5d0] sm:$0xff] }
  0x91   :  { %1956 = vmatpush.bf16.msra.mxu0 %v3129_v52  ;;  %v3156_v52 = vld [vmem:[#allocation5 + $0x508] sm:$0xff] }
  0x92   :  { %1970 = vmatpush.bf16.msra.mxu1 %v3137_v53  ;;  %v3164_v53 = vld [vmem:[#allocation5 + $0x548] sm:$0xff] }
  0x93   :  { %1984 = vmatpush.bf16.msra.mxu2 %v3145_v54  ;;  %v3172_v54 = vld [vmem:[#allocation5 + $0x588] sm:$0xff] }
  0x94   :  { %1998 = vmatpush.bf16.msra.mxu3 %v3153_v55  ;;  %v3180_v55 = vld [vmem:[#allocation5 + $0x5c8] sm:$0xff] }
  0x95   :  { %1957 = vmatpush.bf16.msra.mxu0 %v3128_v56  ;;  %v3155_v56 = vld [vmem:[#allocation5 + $0x500] sm:$0xff] }
  0x96   :  { %1971 = vmatpush.bf16.msra.mxu1 %v3136_v57  ;;  %v3163_v57 = vld [vmem:[#allocation5 + $0x540] sm:$0xff] }
  0x97   :  { %1985 = vmatpush.bf16.msra.mxu2 %v3144_v58  ;;  %v3171_v58 = vld [vmem:[#allocation5 + $0x580] sm:$0xff] }
  0x98   :  { %1999 = vmatpush.bf16.msra.mxu3 %v3152_v59  ;;  %v3179_v59 = vld [vmem:[#allocation5 + $0x5c0] sm:$0xff] }
  0x99   :  { %1958 = vmatpush.bf16.msra.mxu0 %v3127_v60  ;;  %v2189_v60 = vld [vmem:[#allocation2 + $0x50] sm:$0xf] }
  0x9a   :  { %1972 = vmatpush.bf16.msra.mxu1 %v3135_v61  ;;  %v2993_v61 = vld [vmem:[#allocation2 + $0xac] sm:$0xf0] }
  0x9b   :  { %1986 = vmatpush.bf16.msra.mxu2 %v3143_v62  ;;  %v2981_v62 = vld [vmem:[#allocation2 + $0x54] sm:$0xf] }
  0x9c   :  { %2000 = vmatpush.bf16.msra.mxu3 %v3151_v63  ;;  %v2191_v63 = vld [vmem:[#allocation2 + $0xb0] sm:$0xf0] }
  0x9d   :  { %1959 = vmatpush.bf16.msra.mxu0 %v3126_v0  ;;  %v2197_v0 = vld [vmem:[#allocation2 + $0x58] sm:$0xf] }
  0x9e   :  { %1973 = vmatpush.bf16.msra.mxu1 %v3134_v1  ;;  %v2994_v1 = vld [vmem:[#allocation2 + $0xb4] sm:$0xf0] }
  0x9f   :  { %1987 = vmatpush.bf16.msra.mxu2 %v3142_v2  ;;  %v2982_v2 = vld [vmem:[#allocation2 + $0x5c] sm:$0xf] }
  0xa0   :  { %2001 = vmatpush.bf16.msra.mxu3 %v3150_v3  ;;  %v2199_v3 = vld [vmem:[#allocation2 + $0xb8] sm:$0xf0] }
  0xa1   :  { %1960 = vmatpush.bf16.msra.mxu0 %v3125_v4  ;;  %v2190_v4 = vor.u32 %v2993_v61, %v2189_v60 }
  0xa2   :  { %1974 = vmatpush.bf16.msra.mxu1 %v3133_v5  ;;  %v2194_v5 = vor.u32 %v2981_v62, %v2191_v63 }
  0xa3   :  { %1988 = vmatpush.bf16.msra.mxu2 %v3141_v6  ;;  %v2198_v6 = vor.u32 %v2994_v1, %v2197_v0 }
  0xa4   :  { %2002 = vmatpush.bf16.msra.mxu3 %v3149_v7  ;;  %v2202_v7 = vor.u32 %v2982_v2, %v2199_v3 }
  0xa5   :  { %1961 = vmatpush.bf16.msra.mxu0 %v3124_v8 }
  0xa6   :  { %1975 = vmatpush.bf16.msra.mxu1 %v3132_v9 }
  0xa7   :  { %1989 = vmatpush.bf16.msra.mxu2 %v3140_v10 }
  0xa8   :  { %2003 = vmatpush.bf16.msra.mxu3 %v3148_v11 }
  0xa9   :  { %1962 = vmatpush.bf16.msra.mxu0 %v3123_v12  ;;  %v1740_v8 = vpop.f32.mrf.mxu0 }
  0xaa   :  { %1976 = vmatpush.bf16.msra.mxu1 %v3131_v13  ;;  %v1754_v9 = vpop.f32.mrf.mxu1  ;;  %v1741_v21 = vadd.f32 %v3196_v18, %v1740_v8 }
  0xab   :  { %1990 = vmatpush.bf16.msra.mxu2 %v3139_v14 }
  0xac   :  { %2004 = vmatpush.bf16.msra.mxu3 %v3147_v15  ;;  %1963 = vmatmul.bf16.vlgmr.msra.gmra.mxu0 %v2174_v28  ;;  %v1755_v23 = vadd.f32 %v1754_v9, %v1741_v21 }
  0xad   :  { %2011 = vmatpush.bf16.msrb.mxu0 %v3162_v16  ;;  %1977 = vmatmul.bf16.vlgmr.msra.gmra.mxu1 %v2178_v30 }
  0xae   :  { %2025 = vmatpush.bf16.msrb.mxu1 %v3170_v17  ;;  %1991 = vmatmul.bf16.vlgmr.msra.gmra.mxu2 %v2182_v29 }
  0xaf   :  { %2039 = vmatpush.bf16.msrb.mxu2 %v3178_v26  ;;  %2005 = vmatmul.bf16.vlgmr.msra.gmra.mxu3 %v2186_v31 }
  0xb0   :  { %2053 = vmatpush.bf16.msrb.mxu3 %v3186_v27 }
  0xb1   :  { %2012 = vmatpush.bf16.msrb.mxu0 %v3161_v32  ;;  %v1768_v10 = vpop.f32.mrf.mxu2  ;;  %v1742_v12 = vpop.f32.mrf.mxu0 }
  0xb2   :  { %2026 = vmatpush.bf16.msrb.mxu1 %v3169_v33  ;;  %v1782_v11 = vpop.f32.mrf.mxu3  ;;  %v1756_v13 = vpop.f32.mrf.mxu1  ;;  %v1769_v25 = vadd.f32 %v1768_v10, %v1755_v23  ;;  %v1743_v28 = vadd.f32 %v3196_v18, %v1742_v12 }
  0xb3   :  { %2040 = vmatpush.bf16.msrb.mxu2 %v3177_v34 }
  0xb4   :  { %2054 = vmatpush.bf16.msrb.mxu3 %v3185_v35  ;;  %v1783_v30 = vadd.f32 %v1782_v11, %v1769_v25  ;;  %v1757_v32 = vadd.f32 %v1756_v13, %v1743_v28 }
  0xb5   :  { %2013 = vmatpush.bf16.msrb.mxu0 %v3160_v36 }
  0xb6   :  { %2027 = vmatpush.bf16.msrb.mxu1 %v3168_v37 }
  0xb7   :  { %2041 = vmatpush.bf16.msrb.mxu2 %v3176_v38 }
  0xb8   :  { %2055 = vmatpush.bf16.msrb.mxu3 %v3184_v39 }
  0xb9   :  { %2014 = vmatpush.bf16.msrb.mxu0 %v3159_v40  ;;  %v1770_v14 = vpop.f32.mrf.mxu2 }
  0xba   :  { %2028 = vmatpush.bf16.msrb.mxu1 %v3167_v41  ;;  %v1784_v15 = vpop.f32.mrf.mxu3  ;;  %v1771_v36 = vadd.f32 %v1770_v14, %v1757_v32 }
  0xbb   :  { %2042 = vmatpush.bf16.msrb.mxu2 %v3175_v42 }
  0xbc   :  { %2056 = vmatpush.bf16.msrb.mxu3 %v3183_v43  ;;  %v1785_v39 = vadd.f32 %v1784_v15, %v1771_v36 }
  0xbd   :  { %2015 = vmatpush.bf16.msrb.mxu0 %v3158_v44 }
  0xbe   :  { %2029 = vmatpush.bf16.msrb.mxu1 %v3166_v45 }
  0xbf   :  { %2043 = vmatpush.bf16.msrb.mxu2 %v3174_v46 }
  0xc0   :  { %2057 = vmatpush.bf16.msrb.mxu3 %v3182_v47 }
  0xc1   :  { %2016 = vmatpush.bf16.msrb.mxu0 %v3157_v48 }
  0xc2   :  { %2030 = vmatpush.bf16.msrb.mxu1 %v3165_v49 }
  0xc3   :  { %2044 = vmatpush.bf16.msrb.mxu2 %v3173_v50 }
  0xc4   :  { %2058 = vmatpush.bf16.msrb.mxu3 %v3181_v51 }
  0xc5   :  { %2017 = vmatpush.bf16.msrb.mxu0 %v3156_v52 }
  0xc6   :  { %2031 = vmatpush.bf16.msrb.mxu1 %v3164_v53 }
  0xc7   :  { %2045 = vmatpush.bf16.msrb.mxu2 %v3172_v54 }
  0xc8   :  { %2059 = vmatpush.bf16.msrb.mxu3 %v3180_v55 }
  0xc9   :  { %2018 = vmatpush.bf16.msrb.mxu0 %v3155_v56  ;;  %v1796_v16 = vpop.f32.mrf.mxu0 }
  0xca   :  { %2032 = vmatpush.bf16.msrb.mxu1 %v3163_v57  ;;  %v1810_v17 = vpop.f32.mrf.mxu1  ;;  %v1797_v33 = vadd.f32 %v1796_v16, %v1783_v30 }
  0xcb   :  { %2046 = vmatpush.bf16.msrb.mxu2 %v3171_v58 }
  0xcc   :  { %2060 = vmatpush.bf16.msrb.mxu3 %v3179_v59  ;;  %2019 = vmatmul.bf16.vlgmr.msrb.gmra.mxu0 %v2190_v4  ;;  %v1811_v37 = vadd.f32 %v1810_v17, %v1797_v33 }
  0xcd   :  { %2033 = vmatmul.bf16.vlgmr.msrb.gmra.mxu1 %v2194_v5 }
  0xce   :  { %2047 = vmatmul.bf16.vlgmr.msrb.gmra.mxu2 %v2198_v6 }
  0xcf   :  { %2061 = vmatmul.bf16.vlgmr.msrb.gmra.mxu3 %v2202_v7 }
  0xd1   :  { %v1824_v19 = vpop.f32.mrf.mxu2  ;;  %v1798_v22 = vpop.f32.mrf.mxu0 }
  0xd2   :  { %v1838_v20 = vpop.f32.mrf.mxu3  ;;  %v1812_v24 = vpop.f32.mrf.mxu1  ;;  %v1825_v41 = vadd.f32 %v1824_v19, %v1811_v37  ;;  %v1799_v42 = vadd.f32 %v1798_v22, %v1785_v39 }
  0xd4   :  { %v1839_v45 = vadd.f32 %v1838_v20, %v1825_v41  ;;  %v1813_v47 = vadd.f32 %v1812_v24, %v1799_v42 }
  0xd9   :  { %v1826_v26 = vpop.f32.mrf.mxu2 }
  0xda   :  { %v1840_v27 = vpop.f32.mrf.mxu3  ;;  %v1827_v50 = vadd.f32 %v1826_v26, %v1813_v47 }
  0xdc   :  { %v1841_v54 = vadd.f32 %v1840_v27, %v1827_v50 }
  0xe9   :  { %v1852_v29 = vpop.f32.mrf.mxu0 }
  0xea   :  { %v1866_v31 = vpop.f32.mrf.mxu1  ;;  %v1853_v48 = vadd.f32 %v1852_v29, %v1839_v45 }
  0xec   :  { %v1867_v51 = vadd.f32 %v1866_v31, %v1853_v48 }
  0xf1   :  { %v1880_v34 = vpop.f32.mrf.mxu2  ;;  %v1854_v38 = vpop.f32.mrf.mxu0 }
  0xf2   :  { %v1894_v35 = vpop.f32.mrf.mxu3  ;;  %v1868_v40 = vpop.f32.mrf.mxu1  ;;  %v1881_v55 = vadd.f32 %v1880_v34, %v1867_v51  ;;  %v1855_v56 = vadd.f32 %v1854_v38, %v1841_v54 }
  0xf4   :  { %v1895_v58 = vadd.f32 %v1894_v35, %v1881_v55  ;;  %v1869_v60 = vadd.f32 %v1868_v40, %v1855_v56 }
  0xf9   :  { %v1882_v43 = vpop.f32.mrf.mxu2 }
  0xfa   :  { %v1896_v44 = vpop.f32.mrf.mxu3  ;;  %v1883_v62 = vadd.f32 %v1882_v43, %v1869_v60 }
  0xfc   :  { %v1897_v3 = vadd.f32 %v1896_v44, %v1883_v62 }
 0x109   :  { %v1908_v46 = vpop.f32.mrf.mxu0 }
 0x10a   :  { %v1922_v49 = vpop.f32.mrf.mxu1  ;;  %v1909_v61 = vadd.f32 %v1908_v46, %v1895_v58 }
 0x10c   :  { %v1923_v1 = vadd.f32 %v1922_v49, %v1909_v61 }
 0x111   :  { %v1936_v52 = vpop.f32.mrf.mxu2  ;;  %v1910_v57 = vpop.f32.mrf.mxu0 }
 0x112   :  { %v1950_v53 = vpop.f32.mrf.mxu3  ;;  %v1924_v59 = vpop.f32.mrf.mxu1  ;;  %v1937_v4 = vadd.f32 %v1936_v52, %v1923_v1  ;;  %v1911_v6 = vadd.f32 %v1910_v57, %v1897_v3 }
 0x114   :  { %v1951_v7 = vadd.f32 %v1950_v53, %v1937_v4  ;;  %v1925_v10 = vadd.f32 %v1924_v59, %v1911_v6 }
 0x119   :  { %v1938_v63 = vpop.f32.mrf.mxu2 }
 0x11a   :  { %v1952_v0 = vpop.f32.mrf.mxu3  ;;  %v1939_v12 = vadd.f32 %v1938_v63, %v1925_v10 }
 0x11c   :  { %v1953_v16 = vadd.f32 %v1952_v0, %v1939_v12 }
 0x129   :  { %v1964_v2 = vpop.f32.mrf.mxu0 }
 0x12a   :  { %v1978_v5 = vpop.f32.mrf.mxu1  ;;  %v1965_v11 = vadd.f32 %v1964_v2, %v1951_v7 }
 0x12c   :  { %v1979_v14 = vadd.f32 %v1978_v5, %v1965_v11 }
 0x131   :  { %v1992_v8 = vpop.f32.mrf.mxu2  ;;  %v1966_v13 = vpop.f32.mrf.mxu0 }
 0x132   :  { %v2006_v9 = vpop.f32.mrf.mxu3  ;;  %v1980_v15 = vpop.f32.mrf.mxu1  ;;  %v1993_v17 = vadd.f32 %v1992_v8, %v1979_v14  ;;  %v1967_v18 = vadd.f32 %v1966_v13, %v1953_v16 }
 0x134   :  { %v2007_v21 = vadd.f32 %v2006_v9, %v1993_v17  ;;  %v1981_v23 = vadd.f32 %v1980_v15, %v1967_v18 }
 0x139   :  { %v1994_v19 = vpop.f32.mrf.mxu2 }
 0x13a   :  { %v2008_v20 = vpop.f32.mrf.mxu3  ;;  %v1995_v26 = vadd.f32 %v1994_v19, %v1981_v23 }
 0x13c   :  { %v2009_v30 = vadd.f32 %v2008_v20, %v1995_v26 }
 0x149   :  { %v2020_v22 = vpop.f32.mrf.mxu0 }
 0x14a   :  { %v2021_v24 = vadd.f32 %v2020_v22, %v2007_v21  ;;  %v2034_v25 = vpop.f32.mrf.mxu1 }
 0x14c   :  { %v2035_v27 = vadd.f32 %v2034_v25, %v2021_v24 }
 0x151   :  { %v2048_v28 = vpop.f32.mrf.mxu2  ;;  %v2022_v32 = vpop.f32.mrf.mxu0 }
 0x152   :  { %v2062_v29 = vpop.f32.mrf.mxu3  ;;  %v2049_v31 = vadd.f32 %v2048_v28, %v2035_v27  ;;  %v2023_v34 = vadd.f32 %v2022_v32, %v2009_v30  ;;  %v2036_v35 = vpop.f32.mrf.mxu1 }
 0x154   :  { %v2063_v33 = vadd.f32 %v2062_v29, %v2049_v31  ;;  %v2037_v36 = vadd.f32 %v2036_v35, %v2023_v34 }
 0x156   :  { %2067 = vmax.xlane.f32.xlu0 %v2063_v33 }
 0x159   :  { %v2050_v37 = vpop.f32.mrf.mxu2 }
 0x15a   :  { %v2051_v38 = vadd.f32 %v2050_v37, %v2037_v36  ;;  %v2064_v39 = vpop.f32.mrf.mxu3 }
 0x15c   :  { %v2065_v40 = vadd.f32 %v2064_v39, %v2051_v38 }
 0x15e   :  { %2069 = vmax.xlane.f32.xlu0 %v2065_v40 }
 0x1c9   :  { %v2068_v41 = vpop.xlane.xlu0 %2067 }
 0x1ca   :  { %v2071_v42 = vsub.f32 %v2063_v33, %v2068_v41 }
 0x1cc   :  { %v2073_v43 = vmul.f32 1.442695, %v2071_v42 }
 0x1ce   :  { %3197 = vpow2.f32 %v2073_v43 }
 0x1d1   :  { %v2070_v44 = vpop.xlane.xlu0 %2069 }
 0x1d2   :  { %v2072_v45 = vsub.f32 %v2065_v40, %v2070_v44 }
 0x1d4   :  { %v3198_v46 = vpop.eup %3197  ;;  %v2075_v47 = vmul.f32 1.442695, %v2072_v45 }
 0x1d5   :  { %2077 = vadd.xlane.f32.xlu1 %v3198_v46 }
 0x1d6   :  { %3199 = vpow2.f32 %v2075_v47 }
 0x1dc   :  { %v3200_v48 = vpop.eup %3199 }
 0x1dd   :  { %2079 = vadd.xlane.f32.xlu1 %v3200_v48 }
 0x248   :  { %v2078_v49 = vpop.xlane.xlu1 %2077 }
 0x249   :  { %3201 = vrcp.f32 %v2078_v49 }
 0x24f   :  { %v3202_v50 = vpop.eup %3201 }
 0x250   :  { %v2083_v51 = vmul.f32 %v3202_v50, %v3198_v46  ;;  %v2080_v52 = vpop.xlane.xlu1 %2079 }
 0x251   :  { %3203 = vrcp.f32 %v2080_v52 }
 0x252   :  { %2085 = vst [vmem:[#allocation7] sm:$0xff] %v2083_v51 }
 0x257   :  { %v3204_v53 = vpop.eup %3203 }
 0x258   :  { %v2084_v54 = vmul.f32 %v3204_v53, %v3200_v48 }
 0x25a   :  { %2086 = vst [vmem:[#allocation7 + $0x8] sm:$0xff] %v2084_v54 }
 0x25b   :  { %2099 = dma.vmem_to_hbm [thread:$0]  %s2092_s26, 256, %s2094_s29, [#allocation4], %s3290_s30, %s3290_s30, %s3291_s4  }
 0x25c   :  { %3281 = dma.done.wait [#allocation4], 256  }
 0x25d   :  { %3282 = vsyncadd [#allocation4], 4294967040 }
 0x25e   :  { %2104 = vsyncpa [#allocation3], 1 }
 0x25f   :  { %2105 = vsyncpa [#allocation6], 1 }
 0x260   :  { %2106 = vsyncpa [#allocation4], 1 }

</bundles_post_ra>
